<compile_context>
chip_gen: v7x
topology: tpu7x:2x2x1
jax: 0.10.0
libtpu: 0.0.40
codegen_flags: <defaults>
</compile_context>

<pallas_src>
import functools

import jax
import jax.numpy as jnp
from jax.experimental import pallas as pl
from jax.experimental.pallas import tpu as pltpu

_LANE = 128
_SUBLANE = 8
_VMEM_BUDGET_BYTES = 12 << 20   # per-step working set; fits all TPU generations


def _round_up(n, m):
    return ((n + m - 1) // m) * m


# ----------------------------------------------------------------------------
# Kernel body: whole MLP fused.  The Python loop unrolls at trace time, every
# hidden matmul hits the MXU, tanh goes to the EUP, and the 1-wide critic head
# is a VPU multiply + lane reduction.  No HBM round-trips between layers.
# refs = (x_ref, w0_ref, b0_ref, ..., w_{L-1}_ref, b_{L-1}_ref, o_ref)
# ----------------------------------------------------------------------------
def _mlp_critic_kernel(num_layers, last_as_reduce, *refs):
    x_ref = refs[0]
    o_ref = refs[-1]
    wb = refs[1:-1]

    h = x_ref[...]
    if h.dtype != jnp.float32:          # keep f32 accumulation, skip no-op cast
        h = h.astype(jnp.float32)

    # Hidden layers: MXU matmul + bias + tanh.
    for layer in range(num_layers - 1):
        w = wb[2 * layer][...]
        b = wb[2 * layer + 1][...]
        h = jnp.tanh(jnp.dot(h, w, preferred_element_type=jnp.float32) + b)

    w_last = wb[2 * (num_layers - 1)][...]
    b_last = wb[2 * (num_layers - 1) + 1][...]
    if last_as_reduce:
        # out_dim == 1: w_last is a (1, fan_in) row.  Broadcast-multiply (VPU)
        # and reduce over lanes (XLU) -> (tile_b, 1).  Avoids a padded 128-wide
        # MXU pass whose output would be >99% discarded.
        out = jnp.sum(h * w_last, axis=-1, keepdims=True) + b_last
    else:
        out = jnp.dot(h, w_last, preferred_element_type=jnp.float32) + b_last

    o_ref[...] = out.astype(o_ref.dtype)


def mlp_critic_forward(x, weights, biases, *, tile_b=4096):
    """Fused MLPCritic forward pass.

    x       : (batch, input_dim) float32
    weights : list of (in_dim, out_dim) float32 arrays (PyTorch W transposed)
    biases  : list of (1, out_dim) float32 arrays
    tile_b  : requested rows of x per grid step (clamped internally)
    """
    num_layers = len(weights)
    if num_layers < 1:
        raise ValueError("number of layers should be positive!")
    batch, input_dim = x.shape
    layer_dims = [(int(w.shape[0]), int(w.shape[1])) for w in weights]
    out_dim = layer_dims[-1][1]
    last_as_reduce = out_dim == 1

    weights = list(weights)
    biases = list(biases)
    if last_as_reduce:
        # Pass the 1-wide head as a lane-dense (1, fan_in) row for the in-kernel
        # broadcast-multiply + reduce (no zero padding anywhere).
        weights[-1] = weights[-1].reshape(1, layer_dims[-1][0])

    # ---- batch tile selection ----------------------------------------------
    tile_b = max(1, int(tile_b))
    if batch >= 2 * _SUBLANE:
        # Keep >= 2 grid steps so the "parallel" batch axis can shard across the
        # two TensorCores on v7x (costs only ~0.35us extra step on v5e/v6e).
        tile_b = min(tile_b, _round_up(pl.cdiv(batch, 2), _SUBLANE))

    # Clamp by a per-step VMEM budget: x block is multi-buffered, and hidden
    # activations / the narrow output lane-pad to 128 inside VMEM.
    widths = [input_dim] + [fo for (_, fo) in layer_dims]
    max_w_lanes = max(_round_up(w, _LANE) for w in widths)
    bytes_per_row = 4 * (3 * _round_up(input_dim, _LANE)
                         + 2 * _round_up(out_dim, _LANE)
                         + 3 * max_w_lanes)
    tile_cap = max(_SUBLANE,
                   (_VMEM_BUDGET_BYTES // bytes_per_row) // _SUBLANE * _SUBLANE)
    tile_b = min(tile_b, tile_cap)

    if tile_b >= batch:
        tile_b = batch                      # single full block, no ragged edge
    else:
        tile_b = max(_SUBLANE, (tile_b // _SUBLANE) * _SUBLANE)
    num_tiles = pl.cdiv(batch, tile_b)
    grid = (num_tiles,)

    # ---- BlockSpecs: x/out tiled over batch, params resident in VMEM --------
    def _make_x_spec():
        if num_tiles >= 3 and hasattr(pl, "Buffered"):
            try:
                return pl.BlockSpec((tile_b, input_dim), lambda i: (i, 0),
                                    pipeline_mode=pl.Buffered(3))
            except TypeError:
                pass
        return pl.BlockSpec((tile_b, input_dim), lambda i: (i, 0))

    x_spec = _make_x_spec()
    o_spec = pl.BlockSpec((tile_b, out_dim), lambda i: (i, 0))
    wb_specs = []
    operands = [x]
    for w, b in zip(weights, biases):
        wb_specs.append(pl.BlockSpec(w.shape, lambda i: (0, 0)))
        wb_specs.append(pl.BlockSpec(b.shape, lambda i: (0, 0)))
        operands.append(w)
        operands.append(b)

    # ---- cost estimate (un-padded HBM traffic) -------------------------------
    flops = 0
    transcendentals = 0
    for li, (fi, fo) in enumerate(layer_dims):
        flops += 2 * batch * fi * fo
        if li < num_layers - 1:
            transcendentals += batch * fo
    param_bytes = sum(int(w.size) + int(b.size) for w, b in zip(weights, biases))
    bytes_accessed = 4 * (batch * (input_dim + out_dim) + param_bytes)

    kernel = functools.partial(_mlp_critic_kernel, num_layers, last_as_reduce)
    # TODO(synk): optionally cast weights/activations to bf16 on v6e/v7x (keep
    # f32 accumulation) to halve the dominant HBM read; kept f32 here for exact
    # parity with the PyTorch reference.
    return pl.pallas_call(
        kernel,
        out_shape=jax.ShapeDtypeStruct((batch, out_dim), jnp.float32),
        grid=grid,
        in_specs=[x_spec] + wb_specs,
        out_specs=o_spec,
        compiler_params=pltpu.CompilerParams(
            dimension_semantics=("parallel",)),
        cost_estimate=pl.CostEstimate(
            flops=int(flops),
            transcendentals=int(transcendentals),
            bytes_accessed=int(bytes_accessed)),
    )(*operands)


# ----------------------------------------------------------------------------
# Deterministic parameter init (mirrors nn.Linear's U(-1/sqrt(fan_in), +...)).
# ----------------------------------------------------------------------------
def init_mlp_critic_params(key, num_layers, input_dim, hidden_dim, output_dim):
    if num_layers < 1:
        raise ValueError("number of layers should be positive!")
    if num_layers == 1:
        dims = [(input_dim, output_dim)]
    else:
        dims = [(input_dim, hidden_dim)]
        dims += [(hidden_dim, hidden_dim)] * (num_layers - 2)
        dims += [(hidden_dim, output_dim)]

    weights, biases = [], []
    for (fan_in, fan_out) in dims:
        key, kw, kb = jax.random.split(key, 3)
        bound = 1.0 / jnp.sqrt(jnp.float32(fan_in))
        # stored as (in, out)  ==  PyTorch weight (out, in) transposed
        w = jax.random.uniform(kw, (fan_in, fan_out), jnp.float32, -bound, bound)
        b = jax.random.uniform(kb, (1, fan_out), jnp.float32, -bound, bound)
        weights.append(w)
        biases.append(b)
    return weights, biases


def mlp_critic_reference(x, weights, biases):
    """Pure-JAX reference matching the PyTorch forward."""
    h = x
    n = len(weights)
    for i in range(n - 1):
        h = jnp.tanh(h @ weights[i] + biases[i])
    return h @ weights[-1] + biases[-1]


if __name__ == "__main__":
    # Small shapes consistent with the module: critic value head (output_dim=1),
    # input_dim = hidden_dim = 32, num_layers = 3.
    num_layers, input_dim, hidden_dim, output_dim = 3, 32, 32, 1
    batch = 64

    key = jax.random.PRNGKey(0)
    key, kx = jax.random.split(key)
    x = jax.random.normal(kx, (batch, input_dim), jnp.float32)

    weights, biases = init_mlp_critic_params(
        key, num_layers, input_dim, hidden_dim, output_dim)

    # Main path: >= 2 grid steps (v7x megacore sharding of the batch axis).
    out = jax.block_until_ready(mlp_critic_forward(x, weights, biases))
    ref = mlp_critic_reference(x, weights, biases)
    assert out.shape == (batch, output_dim), out.shape
    assert jnp.allclose(out, ref, atol=1e-5, rtol=1e-5), (
        f"max abs err {jnp.max(jnp.abs(out - ref))}")

    # Ragged batch (not a multiple of the tile) -> partial final block, no pad.
    xr = x[:50]
    outr = jax.block_until_ready(
        mlp_critic_forward(xr, weights, biases, tile_b=16))
    refr = mlp_critic_reference(xr, weights, biases)
    assert outr.shape == (50, output_dim), outr.shape
    assert jnp.allclose(outr, refr, atol=1e-5, rtol=1e-5), (
        f"max abs err {jnp.max(jnp.abs(outr - refr))}")

    # num_layers == 1 (pure linear) path of the module.
    w1, b1 = init_mlp_critic_params(
        jax.random.PRNGKey(1), 1, input_dim, hidden_dim, output_dim)
    out1 = jax.block_until_ready(mlp_critic_forward(x, w1, b1))
    ref1 = mlp_critic_reference(x, w1, b1)
    assert jnp.allclose(out1, ref1, atol=1e-5, rtol=1e-5)

    print("KERNEL_OK")
</pallas_src>

<mosaic_0001>
module attributes {stable_mosaic.version = 11 : i64} {
  func.func @_mlp_critic_kernel(%arg0: i32, %arg1: memref<32x32xf32, #tpu.memory_space<vmem>>, %arg2: memref<32x32xf32, #tpu.memory_space<vmem>>, %arg3: memref<1x32xf32, #tpu.memory_space<vmem>>, %arg4: memref<32x32xf32, #tpu.memory_space<vmem>>, %arg5: memref<1x32xf32, #tpu.memory_space<vmem>>, %arg6: memref<1x32xf32, #tpu.memory_space<vmem>>, %arg7: memref<1x1xf32, #tpu.memory_space<vmem>>, %arg8: memref<32x1xf32, #tpu.memory_space<vmem>>) attributes {dimension_semantics = [#tpu.dimension_semantics<parallel>], iteration_bounds = array<i64: 2>, scalar_prefetch = 0 : i64, scratch_operands = 0 : i64, tpu.core_type = #tpu.core_type<tc>, window_params = [{transform_indices = @transform_0, window_bounds = array<i64: 32, 32>}, {pipeline_mode = #tpu.pipeline_mode<synchronous>, transform_indices = @transform_1, window_bounds = array<i64: 32, 32>}, {pipeline_mode = #tpu.pipeline_mode<synchronous>, transform_indices = @transform_2, window_bounds = array<i64: 1, 32>}, {pipeline_mode = #tpu.pipeline_mode<synchronous>, transform_indices = @transform_3, window_bounds = array<i64: 32, 32>}, {pipeline_mode = #tpu.pipeline_mode<synchronous>, transform_indices = @transform_4, window_bounds = array<i64: 1, 32>}, {pipeline_mode = #tpu.pipeline_mode<synchronous>, transform_indices = @transform_5, window_bounds = array<i64: 1, 32>}, {pipeline_mode = #tpu.pipeline_mode<synchronous>, transform_indices = @transform_6, window_bounds = array<i64: 1, 1>}, {transform_indices = @transform_7, window_bounds = array<i64: 32, 1>}]} {
    %c0 = arith.constant 0 : index
    %c0_0 = arith.constant 0 : index
    %0 = vector.load %arg1[%c0, %c0_0] : memref<32x32xf32, #tpu.memory_space<vmem>>, vector<32x32xf32>
    %c0_1 = arith.constant 0 : index
    %c0_2 = arith.constant 0 : index
    %1 = vector.load %arg2[%c0_1, %c0_2] : memref<32x32xf32, #tpu.memory_space<vmem>>, vector<32x32xf32>
    %c0_3 = arith.constant 0 : index
    %c0_4 = arith.constant 0 : index
    %2 = vector.load %arg3[%c0_3, %c0_4] : memref<1x32xf32, #tpu.memory_space<vmem>>, vector<1x32xf32>
    %cst = arith.constant dense<0.000000e+00> : vector<32x32xf32>
    %3 = tpu.matmul %0, %1, %cst {dimension_numbers = #tpu.dot_dimension_numbers<[1], [0], [0], [1], [0, 0, 1, 1], [], []>} : vector<32x32xf32>, vector<32x32xf32>, vector<32x32xf32> -> vector<32x32xf32>
    %4 = vector.broadcast %2 : vector<1x32xf32> to vector<32x32xf32>
    %5 = arith.addf %3, %4 : vector<32x32xf32>
    %6 = math.tanh %5 : vector<32x32xf32>
    %c0_5 = arith.constant 0 : index
    %c0_6 = arith.constant 0 : index
    %7 = vector.load %arg4[%c0_5, %c0_6] : memref<32x32xf32, #tpu.memory_space<vmem>>, vector<32x32xf32>
    %c0_7 = arith.constant 0 : index
    %c0_8 = arith.constant 0 : index
    %8 = vector.load %arg5[%c0_7, %c0_8] : memref<1x32xf32, #tpu.memory_space<vmem>>, vector<1x32xf32>
    %cst_9 = arith.constant dense<0.000000e+00> : vector<32x32xf32>
    %9 = tpu.matmul %6, %7, %cst_9 {dimension_numbers = #tpu.dot_dimension_numbers<[1], [0], [0], [1], [0, 0, 1, 1], [], []>} : vector<32x32xf32>, vector<32x32xf32>, vector<32x32xf32> -> vector<32x32xf32>
    %10 = vector.broadcast %8 : vector<1x32xf32> to vector<32x32xf32>
    %11 = arith.addf %9, %10 : vector<32x32xf32>
    %12 = math.tanh %11 : vector<32x32xf32>
    %c0_10 = arith.constant 0 : index
    %c0_11 = arith.constant 0 : index
    %13 = vector.load %arg6[%c0_10, %c0_11] : memref<1x32xf32, #tpu.memory_space<vmem>>, vector<1x32xf32>
    %c0_12 = arith.constant 0 : index
    %c0_13 = arith.constant 0 : index
    %14 = vector.load %arg7[%c0_12, %c0_13] : memref<1x1xf32, #tpu.memory_space<vmem>>, vector<1x1xf32>
    %15 = vector.broadcast %13 : vector<1x32xf32> to vector<32x32xf32>
    %16 = arith.mulf %12, %15 : vector<32x32xf32>
    %cst_14 = arith.constant dense<0.000000e+00> : vector<32xf32>
    %17 = vector.multi_reduction <add>, %16, %cst_14 [1] : vector<32x32xf32> to vector<32xf32>
    %18 = vector.shape_cast %17 : vector<32xf32> to vector<32x1xf32>
    %19 = vector.broadcast %14 : vector<1x1xf32> to vector<32x1xf32>
    %20 = arith.addf %18, %19 : vector<32x1xf32>
    %c0_15 = arith.constant 0 : index
    %c0_16 = arith.constant 0 : index
    %21 = vector.load %arg8[%c0_15, %c0_16] : memref<32x1xf32, #tpu.memory_space<vmem>>, vector<32x1xf32>
    tpu.vector_store %arg8[%c0_15, %c0_16], %20 {strides = array<i32>} : memref<32x1xf32, #tpu.memory_space<vmem>>, vector<32x1xf32>,
    return
  }
  func.func @transform_0(%arg0: i32) -> (i32, i32) {
    %c0_i32 = arith.constant 0 : i32
    %c0_i32_0 = arith.constant 0 : i32
    return %arg0, %c0_i32 : i32, i32
  }
  func.func @transform_1(%arg0: i32) -> (i32, i32) {
    %c0_i32 = arith.constant 0 : i32
    %c0_i32_0 = arith.constant 0 : i32
    %c0_i32_1 = arith.constant 0 : i32
    return %c0_i32, %c0_i32_0 : i32, i32
  }
  func.func @transform_2(%arg0: i32) -> (i32, i32) {
    %c0_i32 = arith.constant 0 : i32
    %c0_i32_0 = arith.constant 0 : i32
    %c0_i32_1 = arith.constant 0 : i32
    return %c0_i32, %c0_i32_0 : i32, i32
  }
  func.func @transform_3(%arg0: i32) -> (i32, i32) {
    %c0_i32 = arith.constant 0 : i32
    %c0_i32_0 = arith.constant 0 : i32
    %c0_i32_1 = arith.constant 0 : i32
    return %c0_i32, %c0_i32_0 : i32, i32
  }
  func.func @transform_4(%arg0: i32) -> (i32, i32) {
    %c0_i32 = arith.constant 0 : i32
    %c0_i32_0 = arith.constant 0 : i32
    %c0_i32_1 = arith.constant 0 : i32
    return %c0_i32, %c0_i32_0 : i32, i32
  }
  func.func @transform_5(%arg0: i32) -> (i32, i32) {
    %c0_i32 = arith.constant 0 : i32
    %c0_i32_0 = arith.constant 0 : i32
    %c0_i32_1 = arith.constant 0 : i32
    return %c0_i32, %c0_i32_0 : i32, i32
  }
  func.func @transform_6(%arg0: i32) -> (i32, i32) {
    %c0_i32 = arith.constant 0 : i32
    %c0_i32_0 = arith.constant 0 : i32
    %c0_i32_1 = arith.constant 0 : i32
    return %c0_i32, %c0_i32_0 : i32, i32
  }
  func.func @transform_7(%arg0: i32) -> (i32, i32) {
    %c0_i32 = arith.constant 0 : i32
    %c0_i32_0 = arith.constant 0 : i32
    return %arg0, %c0_i32 : i32, i32
  }
}

</mosaic_0001>

<bundles_post_ra>
// kernel: tpu_custom_call.1
= control target key start
LH: loop header
LB: loop body
LE: loop exit
PB: predicated region body
PF: predicated region fallthrough
CT: control target
= control target key end

     0   :  { %s766_s26 = smov 0   ;;  %s835_s0 = inlined_call_operand.vmem [shape: f32[64,32], index: 0, kind: input, shape index: {}]   ;;  %s836_s1 = inlined_call_operand.vmem [shape: f32[32,32], index: 1, kind: input, shape index: {}]   ;;  %s837_s2 = inlined_call_operand.vmem [shape: f32[1,32], index: 2, kind: input, shape index: {}]   ;;  %s838_s3 = inlined_call_operand.vmem [shape: f32[32,32], index: 3, kind: input, shape index: {}]   ;;  %s839_s4 = inlined_call_operand.vmem [shape: f32[1,32], index: 4, kind: input, shape index: {}]   ;;  %s840_s5 = inlined_call_operand.vmem [shape: f32[1,32], index: 5, kind: input, shape index: {}]   ;;  %s841_s6 = inlined_call_operand.<no memory space> [shape: f32[1,1], index: 6, kind: input, shape index: {}]   ;;  %s842_s7 = inlined_call_operand.vmem [shape: f32[64,1], index: 7, kind: output, shape index: {}]  }
   0x1   :  { %v12_v0 = vstv %s841_s6 }
   0x2   :  { %13 = vst [vmem:[#allocation2] sm:$0x1] %v12_v0 }
   0x3 LB: > { %s608_s27 = sadd.s32 4294967295, %s721_s26   ;;  %p612_p0 = scmp.ge.s32.totalorder %s721_s26, 1  ;;  %s721_s26 = sphi %s766_s26, %s19_s26  }
   0x4   : > { %p240_p1 = scmp.lt.s32.totalorder %s721_s26, 3 }
   0x6   : > { %p241_p2 = pnand %p612_p0, %p240_p1 }
   0x7   : > { %v288_v1 = vld [vmem:[%s836_s1] sm:$0xff] (!%p241_p2)  ;;  %v289_v2 = vld [vmem:[%s836_s1 + $0x8] sm:$0xff] (!%p241_p2)  ;;  %v290_v3 = vld [vmem:[%s836_s1 + $0x10] sm:$0xff] (!%p241_p2)  ;;  %s613_s10 = sshll.u32 (!%p241_p2), %s608_s27, 2  ;;  %vm299_vm0 = vcmask (!%p241_p2), 261120   ;;  %vm547_vm1 = vcmask (!%p241_p2), 7168  }
   0x8   : > { %244 = sbr.rel (%p241_p2) target bundleno = 629 (0x275), region = 48  ;;  %v675_v4 = vpack.c.bf16 (!%p241_p2), %v289_v2, %v288_v1  ;;  %v291_v5 = vld [vmem:[%s836_s1 + $0x18] sm:$0xff] (!%p241_p2)  ;;  %p273_p3 = scmp.lt.s32.totalorder (!%p241_p2), %s613_s10, 7  ;;  %v401_v11 = vld [vmem:[%s838_s3] sm:$0xff] (!%p241_p2)  ;;  %v402_v12 = vld [vmem:[%s838_s3 + $0x8] sm:$0xff] (!%p241_p2) }
   0x9   : > { %v679_v6 = vpack.c.bf16 (!%p241_p2), %v291_v5, %v290_v3  ;;  %v683_v13 = vpack.c.bf16 (!%p241_p2), %v402_v12, %v401_v11  ;;  %v403_v14 = vld [vmem:[%s838_s3 + $0x10] sm:$0xff] (!%p241_p2)  ;;  %v404_v15 = vld [vmem:[%s838_s3 + $0x18] sm:$0xff] (!%p241_p2)  ;;  %v617_v17 = vld [vmem:[%s837_s2] ss:$0 sm:$0xff] (!%p241_p2) }
   0xa   : > { %676 = vmatprep.subr.bf16.mxu0 (!%p241_p2), %v675_v4  ;;  %v687_v16 = vpack.c.bf16 (!%p241_p2), %v404_v15, %v403_v14  ;;  %v622_v30 = vld [vmem:[%s839_s4] ss:$0 sm:$0xff] (!%p241_p2) }
   0xb   : > { %678 = vmatpush3.bf16.msra.mxu0 (!%p241_p2), %v675_v4  ;;  %684 = vmatprep.subr.bf16.mxu1 (!%p241_p2), %v683_v13  ;;  %v627_v39 = vld [vmem:[%s840_s5] ss:$0 sm:$0xff] (!%p241_p2) }
   0xc   : > { %680 = vmatprep.subr.bf16.mxu0 (!%p241_p2), %v679_v6  ;;  %686 = vmatpush3.bf16.msra.mxu1 (!%p241_p2), %v683_v13  ;;  %v628_v52 = vld [vmem:[#allocation2] ss:$0 sm:$0xff] (!%p241_p2) }
   0xd   : > { %688 = vmatprep.subr.bf16.mxu1 (!%p241_p2), %v687_v16 }
   0xf   : > { %s844_s10 = smov (!%p273_p3, %s613_s10), 7  ;;  %682 = vmatpush3.bf16.msra.mxu0 %v679_v6 }
  0x10   : > { %s614_s13 = sshll.u32 %s844_s10, 3  ;;  %690 = vmatpush3.bf16.msra.mxu1 %v687_v16 }
  0x11   : > { %s276_s16 = scalar_lea.vmem %s835_s0, %s614_s13  ;;  %s282_s11 = scalar_lea.vmem %s842_s7, %s614_s13 }
  0x12   : > { %v284_v7 = vld [vmem:[%s276_s16] sm:$0xff]  ;;  %v285_v8 = vld [vmem:[%s276_s16 + $0x8] sm:$0xff]  ;;  %v286_v9 = vld [vmem:[%s276_s16 + $0x10] sm:$0xff] }
  0x13   : > { %655 = vmatprep.mubr.msk.f32.mxu0 %vm299_vm0, %v284_v7  ;;  %v287_v10 = vld [vmem:[%s276_s16 + $0x18] sm:$0xff] }
  0x14   : > { %656 = vmatmul.mubr.msk.f32.vlgmr.msra.gmra.mrb[0].mxu0 %vm299_vm0, %v285_v8 }
  0x15   : > { %658 = vmatprep.mubr.msk.f32.mxu0 %vm299_vm0, %v286_v9 }
  0x18   : > { %659 = vmatmul.mubr.msk.f32.gmra.mrb[2].mxu0 %vm299_vm0, %v287_v10 }
  0xe7   : > { %v657_v18 = vpop.f32.mrb[0].mxu0 }
  0xe8   : > { %v384_v19 = vadd.f32 %v657_v18, %v617_v17  ;;  %v378_v20 = vpop.f32.mrb[1].mxu0 }
  0xe9   : > { %v379_v21 = vadd.f32 %v617_v17, %v378_v20 }
  0xeb   : > { %699 = vtanh.f32 %v379_v21  ;;  %v660_v22 = vpop.f32.mrb[2].mxu0 }
  0xec   : > { %701 = vtanh.f32 %v384_v19  ;;  %v394_v23 = vadd.f32 %v660_v22, %v617_v17  ;;  %v388_v24 = vpop.f32.mrb[3].mxu0 }
  0xed   : > { %v389_v25 = vadd.f32 %v617_v17, %v388_v24 }
  0xef   : > { %703 = vtanh.f32 %v389_v25 }
  0xf0   : > { %705 = vtanh.f32 %v394_v23 }
  0xf5   : > { %v700_v26 = vpop.eup %699 }
  0xf6   : > { %v702_v27 = vpop.eup %701  ;;  %669 = vmatprep.mubr.msk.f32.mxu1 %vm299_vm0, %v700_v26 }
  0xf7   : > { %670 = vmatmul.mubr.msk.f32.vlgmr.msra.gmra.mrb[0].mxu1 %vm299_vm0, %v702_v27 }
  0xf9   : > { %v704_v28 = vpop.eup %703 }
  0xfa   : > { %v706_v29 = vpop.eup %705  ;;  %672 = vmatprep.mubr.msk.f32.mxu1 %vm299_vm0, %v704_v28 }
  0xfb   : > { %673 = vmatmul.mubr.msk.f32.gmra.mrb[2].mxu1 %vm299_vm0, %v706_v29 }
 0x1ca   : > { %v671_v31 = vpop.f32.mrb[0].mxu1 }
 0x1cb   : > { %v496_v32 = vadd.f32 %v671_v31, %v622_v30  ;;  %v490_v33 = vpop.f32.mrb[1].mxu1 }
 0x1cc   : > { %v491_v34 = vadd.f32 %v622_v30, %v490_v33 }
 0x1cd   : > { %707 = vtanh.f32 %v496_v32 }
 0x1ce   : > { %709 = vtanh.f32 %v491_v34  ;;  %v674_v35 = vpop.f32.mrb[2].mxu1 }
 0x1cf   : > { %v506_v36 = vadd.f32 %v674_v35, %v622_v30  ;;  %v500_v37 = vpop.f32.mrb[3].mxu1 }
 0x1d0   : > { %v501_v38 = vadd.f32 %v622_v30, %v500_v37 }
 0x1d1   : > { %711 = vtanh.f32 %v506_v36 }
 0x1d2   : > { %713 = vtanh.f32 %v501_v38 }
 0x1d7   : > { %v708_v40 = vpop.eup %707 }
 0x1d8   : > { %v710_v41 = vpop.eup %709  ;;  %v522_v45 = vmul.f32 %v708_v40, %v627_v39 }
 0x1d9   : > { %v521_v42 = vmul.f32 %v710_v41, %v627_v39 }
 0x1da   : > { %v528_v49 = vsel %vm299_vm0, %v522_v45, 0.0 }
 0x1db   : > { %v712_v43 = vpop.eup %711  ;;  %v525_v44 = vsel %vm299_vm0, %v521_v42, 0.0 }
 0x1dc   : > { %v714_v46 = vpop.eup %713  ;;  %526 = vadd.xlane.f32.xlu0 %v525_v44  ;;  %v524_v50 = vmul.f32 %v712_v43, %v627_v39 }
 0x1dd   : > { %v523_v47 = vmul.f32 %v714_v46, %v627_v39 }
 0x1de   : > { %v534_v51 = vsel %vm299_vm0, %v524_v50, 0.0 }
 0x1df   : > { %v531_v48 = vsel %vm299_vm0, %v523_v47, 0.0 }
 0x1e0   : > { %532 = vadd.xlane.f32.xlu1 %v531_v48  ;;  %529 = vadd.xlane.f32.xlu0 %v528_v49 }
 0x1e4   : > { %535 = vadd.xlane.f32.xlu1 %v534_v51 }
 0x269   : > { %v527_v53 = vpop.xlane.xlu0 %526 }
 0x26a   : > { %v543_v54 = vadd.f32 %v628_v52, %v527_v53 }
 0x26c   : > { %548 = vst.msk [vmem:[%s282_s11] sm:$0xff] %vm547_vm1, %v543_v54 }
 0x26d   : > { %v533_v55 = vpop.xlane.xlu1 %532  ;;  %v530_v56 = vpop.xlane.xlu0 %529 }
 0x26e   : > { %v545_v57 = vadd.f32 %v628_v52, %v533_v55  ;;  %v544_v58 = vadd.f32 %v628_v52, %v530_v56 }
 0x270   : > { %549 = vst.msk [vmem:[%s282_s11 + $0x8] sm:$0xff] %vm547_vm1, %v544_v58  ;;  %550 = vst.msk [vmem:[%s282_s11 + $0x10] sm:$0xff] %vm547_vm1, %v545_v57 }
 0x271   : > { %v536_v59 = vpop.xlane.xlu1 %535 }
 0x272   : > { %v546_v60 = vadd.f32 %v628_v52, %v536_v59 }
 0x274   : > { %551 = vst.msk [vmem:[%s282_s11 + $0x18] sm:$0xff] %vm547_vm1, %v546_v60 }
 0x275 PF: > { %s19_s26 = sadd.s32 1, %s721_s26  }
 0x276   : > { %p16_p4 = scmp.ge.s32.totalorder %s19_s26, 4  }
 0x278   :  { %18 = sbr.rel (!%p16_p4) target bundleno = 3 (0x3), region = 78 }

</bundles_post_ra>
